<compile_context>
chip_gen: v7x
topology: tpu7x:2x2x1
jax: 0.10.0
libtpu: 0.0.40
codegen_flags: <defaults>
</compile_context>

<pallas_src>
import functools
import math

import jax
import jax.numpy as jnp
from jax import lax
from jax.experimental import pallas as pl
from jax.experimental.pallas import tpu as pltpu


def _pick_tile(dim, candidates=(512, 256, 128)):
    """Largest candidate tile that evenly divides `dim`, else the full dim."""
    for c in candidates:
        if dim >= c and dim % c == 0:
            return c
    return dim


# ----------------------------------------------------------------------------
# Kernel 1: tiled batched dense layer   y[b] = x[b] @ W_t + bias
# ----------------------------------------------------------------------------
def _linear_kernel_acc(x_ref, w_ref, b_ref, o_ref, acc_ref):
    k = pl.program_id(3)

    @pl.when(k == 0)
    def _():
        acc_ref[...] = jnp.zeros_like(acc_ref)

    acc_ref[...] += jnp.dot(x_ref[...], w_ref[...],
                            preferred_element_type=jnp.float32)

    @pl.when(k == pl.num_programs(3) - 1)
    def _():
        o_ref[...] = (acc_ref[...]
                      + b_ref[...].astype(jnp.float32)).astype(o_ref.dtype)


def _linear_kernel_1k(x_ref, w_ref, b_ref, o_ref):
    # Single contraction step: skip the f32 scratch accumulator entirely.
    acc = jnp.dot(x_ref[...], w_ref[...], preferred_element_type=jnp.float32)
    o_ref[...] = (acc + b_ref[...].astype(jnp.float32)).astype(o_ref.dtype)


def pallas_linear(x, w_t, bias, out_dtype):
    """x: (B, S, Din); w_t: (Din, Dout) pre-transposed (bf16) weight; bias: (Dout,) f32."""
    B, S, Din = x.shape
    Dout = w_t.shape[1]
    if x.dtype != w_t.dtype:
        x = x.astype(w_t.dtype)       # bf16 MXU operands; halves activation DMA
    tm = _pick_tile(S)
    tn = _pick_tile(Dout)
    tk = _pick_tile(Din)
    kt = Din // tk
    common = dict(
        out_shape=jax.ShapeDtypeStruct((B, S, Dout), out_dtype),
        grid=(B, S // tm, Dout // tn, kt),
        in_specs=[
            pl.BlockSpec((None, tm, tk), lambda b, i, j, k: (b, i, k)),
            pl.BlockSpec((tk, tn), lambda b, i, j, k: (k, j)),
            pl.BlockSpec((1, tn), lambda b, i, j, k: (0, j)),
        ],
        out_specs=pl.BlockSpec((None, tm, tn), lambda b, i, j, k: (b, i, j)),
        compiler_params=pltpu.CompilerParams(
            dimension_semantics=("parallel", "parallel", "parallel", "arbitrary")),
    )
    if kt == 1:
        call = pl.pallas_call(_linear_kernel_1k, **common)
    else:
        call = pl.pallas_call(_linear_kernel_acc,
                              scratch_shapes=[pltpu.VMEM((tm, tn), jnp.float32)],
                              **common)
    return call(x, w_t, bias.reshape(1, Dout))


# ----------------------------------------------------------------------------
# Kernel 2: per-(batch, head, q-tile) scaled dot-product attention
# ----------------------------------------------------------------------------
def _attn_kernel(*refs, tq, causal, return_weights):
    if causal:
        q_ref, k_ref, v_ref = refs[:3]
        out_refs = refs[3:]
        m_ref = None
    else:
        q_ref, k_ref, v_ref, m_ref = refs[:4]
        out_refs = refs[4:]

    # scores = q @ k^T without materializing k.T (contract d_k against d_k).
    # 1/sqrt(d_k) is folded into WQ at parameter-prep time.
    scores = lax.dot_general(q_ref[...], k_ref[...], (((1,), (1,)), ((), ())),
                             preferred_element_type=jnp.float32)

    if causal:
        # In-kernel causal mask: two VPU compares, no (B,S,S) mask DMA stream.
        qi = pl.program_id(2)
        row = qi * tq + lax.broadcasted_iota(jnp.int32, scores.shape, 0)
        col = lax.broadcasted_iota(jnp.int32, scores.shape, 1)
        masked = col > row
    else:
        masked = m_ref[...] != 0
    # masked_fill_(attn_mask, -1e9)
    scores = jnp.where(masked, jnp.float32(-1000000000.0), scores)

    # numerically stable softmax along the key axis (f32 math)
    scores = scores - jnp.max(scores, axis=-1, keepdims=True)
    e = jnp.exp(scores)
    denom = jnp.sum(e, axis=-1, keepdims=True)

    if return_weights:
        o_ref, w_ref = out_refs
        weights = e / denom                      # exact division on the returned weights
        w_ref[...] = weights.astype(w_ref.dtype)
    else:
        (o_ref,) = out_refs
        weights = e * pl.reciprocal(denom, approx=True)   # EUP slot, internal only

    out = jnp.dot(weights.astype(v_ref.dtype), v_ref[...],
                  preferred_element_type=jnp.float32)
    o_ref[...] = out.astype(o_ref.dtype)


def pallas_attention(q, k, v, attn_mask, n_heads, d_k, *,
                     head_offsets=(0, 0, 0), causal=False,
                     return_weights=False, weights_dtype=jnp.bfloat16,
                     out_dtype=None):
    """q/k/v: (B, S, n_heads*d_k) packed-head activations (may all be the same
    (B, S, 3*d_model) array for fused QKV — select with head_offsets, given in
    units of d_k-wide head blocks). attn_mask: (B, S, S), nonzero = masked;
    ignored when causal=True (mask generated in-kernel)."""
    B, S, _ = q.shape
    out_dtype = out_dtype or q.dtype
    assert d_k % 128 == 0, "packed-head layout needs lane-aligned (>=128) heads"
    tq = _pick_tile(S, candidates=(256, 128))
    qo, ko, vo = head_offsets

    kernel = functools.partial(_attn_kernel, tq=tq, causal=causal,
                               return_weights=return_weights)

    in_specs = [
        pl.BlockSpec((None, tq, d_k), lambda b, h, qi: (b, qi, qo + h)),
        pl.BlockSpec((None, S, d_k), lambda b, h, qi: (b, 0, ko + h)),
        pl.BlockSpec((None, S, d_k), lambda b, h, qi: (b, 0, vo + h)),
    ]
    args = [q, k, v]
    if not causal:
        mask = attn_mask if attn_mask.dtype == jnp.int8 else attn_mask.astype(jnp.int8)
        in_specs.append(pl.BlockSpec((None, tq, S), lambda b, h, qi: (b, qi, 0)))
        args.append(mask)

    out_spec_o = pl.BlockSpec((None, tq, d_k), lambda b, h, qi: (b, qi, h))
    out_shape_o = jax.ShapeDtypeStruct((B, S, n_heads * d_k), out_dtype)

    if return_weights:
        out_shape = (out_shape_o,
                     jax.ShapeDtypeStruct((B, n_heads, S, S), weights_dtype))
        out_specs = (out_spec_o,
                     pl.BlockSpec((None, None, tq, S),
                                  lambda b, h, qi: (b, h, qi, 0)))
    else:
        out_shape = out_shape_o
        out_specs = out_spec_o

    result = pl.pallas_call(
        kernel,
        out_shape=out_shape,
        grid=(B, n_heads, S // tq),          # qi innermost -> K/V blocks stay resident
        in_specs=in_specs,
        out_specs=out_specs,
        compiler_params=pltpu.CompilerParams(
            dimension_semantics=("parallel", "parallel", "parallel")),
    )(*args)

    if return_weights:
        return result[0], result[1]
    return result, None


# ----------------------------------------------------------------------------
# Parameter preparation (one-time): transpose, concat, scale-fold, bf16 weights
# ----------------------------------------------------------------------------
def prepare_params(params, n_heads, compute_dtype=jnp.bfloat16):
    d_model = params["WQ_w"].shape[0]
    d_k = d_model // n_heads
    scale = 1.0 / math.sqrt(d_k)
    wq = params["WQ_w"] * scale                 # fold 1/sqrt(d_k) into Q projection
    bq = params["WQ_b"] * scale
    return {
        "wq_t": wq.T.astype(compute_dtype),
        "bq": bq.astype(jnp.float32),
        "wk_t": params["WK_w"].T.astype(compute_dtype),
        "bk": params["WK_b"].astype(jnp.float32),
        "wv_t": params["WV_w"].T.astype(compute_dtype),
        "bv": params["WV_b"].astype(jnp.float32),
        "fc_w_t": params["fc_w"].T.astype(compute_dtype),
        "fc_b": params["fc_b"].astype(jnp.float32),
        # fused QKV (self-attention fast path): (d_model, 3*d_model)
        "wqkv_t": jnp.concatenate(
            [wq, params["WK_w"], params["WV_w"]], axis=0).T.astype(compute_dtype),
        "bqkv": jnp.concatenate(
            [bq, params["WK_b"], params["WV_b"]], axis=0).astype(jnp.float32),
    }


# ----------------------------------------------------------------------------
# MultiHeadAttention forward (glue in plain JAX, hot path in Pallas kernels)
# ----------------------------------------------------------------------------
def multi_head_attention(Q, K, V, attn_mask, prep, n_heads, *,
                         return_weights=True, causal=False):
    B, S, d_model = Q.shape
    d_k = d_model // n_heads

    if (Q is K) and (K is V):
        # Fused QKV: one matmul against the pre-concatenated (D, 3D) bf16 weight.
        # The attention BlockSpecs then pick Q/K/V heads straight out of the
        # packed (B, S, 3*d_model) result — no slicing copies, no transposes.
        qkv = pallas_linear(Q, prep["wqkv_t"], prep["bqkv"], out_dtype=jnp.bfloat16)
        attn, attn_weights = pallas_attention(
            qkv, qkv, qkv, attn_mask, n_heads, d_k,
            head_offsets=(0, n_heads, 2 * n_heads),
            causal=causal, return_weights=return_weights,
            out_dtype=jnp.bfloat16)
    else:
        q = pallas_linear(Q, prep["wq_t"], prep["bq"], out_dtype=jnp.bfloat16)
        k = pallas_linear(K, prep["wk_t"], prep["bk"], out_dtype=jnp.bfloat16)
        v = pallas_linear(V, prep["wv_t"], prep["bv"], out_dtype=jnp.bfloat16)
        attn, attn_weights = pallas_attention(
            q, k, v, attn_mask, n_heads, d_k,
            causal=causal, return_weights=return_weights,
            out_dtype=jnp.bfloat16)

    # attn is already (B, S, d_model) in packed-head layout -> feed fc directly.
    output = pallas_linear(attn, prep["fc_w_t"], prep["fc_b"], out_dtype=jnp.float32)
    return output, attn_weights


def init_params(key, d_model):
    """Deterministic init mimicking nn.Linear default: U(-1/sqrt(in), 1/sqrt(in))."""
    bound = 1.0 / (d_model ** 0.5)
    names = ["WQ", "WK", "WV", "fc"]
    params = {}
    keys = jax.random.split(key, 2 * len(names))
    for i, name in enumerate(names):
        params[f"{name}_w"] = jax.random.uniform(
            keys[2 * i], (d_model, d_model), jnp.float32, -bound, bound)
        params[f"{name}_b"] = jax.random.uniform(
            keys[2 * i + 1], (d_model,), jnp.float32, -bound, bound)
    return params


def _reference_mha(Q, K, V, attn_mask, params, n_heads):
    """Pure-JAX f32 reference matching the PyTorch module."""
    B, S, D = Q.shape
    d_k = D // n_heads
    lin = lambda x, w, b: x @ w.T + b
    heads = lambda x: x.reshape(B, S, n_heads, d_k).transpose(0, 2, 1, 3)
    q = heads(lin(Q, params["WQ_w"], params["WQ_b"]))
    k = heads(lin(K, params["WK_w"], params["WK_b"]))
    v = heads(lin(V, params["WV_w"], params["WV_b"]))
    scores = jnp.einsum("bhqd,bhkd->bhqk", q, k) / math.sqrt(d_k)
    scores = jnp.where(attn_mask[:, None, :, :], -1000000000.0, scores)
    w = jax.nn.softmax(scores, axis=-1)
    attn = jnp.einsum("bhqk,bhkd->bhqd", w, v)
    attn = attn.transpose(0, 2, 1, 3).reshape(B, S, D)
    return lin(attn, params["fc_w"], params["fc_b"]), w


if __name__ == "__main__":
    # d_k = d_model / n_heads = 128 -> lane-aligned packed-head blocks.
    B, S, d_model, n_heads = 2, 128, 256, 2

    key = jax.random.PRNGKey(0)
    kq, kk, kv, kp = jax.random.split(key, 4)
    Q = jax.random.normal(kq, (B, S, d_model), jnp.float32)
    K = jax.random.normal(kk, (B, S, d_model), jnp.float32)
    V = jax.random.normal(kv, (B, S, d_model), jnp.float32)

    # causal mask: True where attention is disallowed (masked), shape (B, S, S)
    causal = jnp.triu(jnp.ones((S, S), dtype=bool), k=1)
    attn_mask = jnp.broadcast_to(causal, (B, S, S))

    params = init_params(kp, d_model)
    prep = prepare_params(params, n_heads)   # one-time: transpose/concat/scale/bf16

    # Path 1: cross-attention, explicit (arbitrary) mask, weights returned (bf16).
    out, attn_w = multi_head_attention(Q, K, V, attn_mask, prep, n_heads,
                                       return_weights=True, causal=False)
    jax.block_until_ready(out)
    jax.block_until_ready(attn_w)
    assert out.shape == (B, S, d_model)
    assert attn_w.shape == (B, n_heads, S, S)

    out_ref, w_ref = _reference_mha(Q, K, V, attn_mask, params, n_heads)
    assert jnp.allclose(out, out_ref, atol=2e-2, rtol=2e-2), \
        float(jnp.max(jnp.abs(out - out_ref)))
    assert jnp.allclose(attn_w.astype(jnp.float32), w_ref, atol=2e-2, rtol=2e-2)

    # Path 2: self-attention — fused QKV projection, in-kernel causal mask,
    # attention-weights HBM store skipped (performance default).
    out_self, _ = multi_head_attention(Q, Q, Q, None, prep, n_heads,
                                       return_weights=False, causal=True)
    jax.block_until_ready(out_self)
    out_self_ref, _ = _reference_mha(Q, Q, Q, attn_mask, params, n_heads)
    assert jnp.allclose(out_self, out_self_ref, atol=2e-2, rtol=2e-2), \
        float(jnp.max(jnp.abs(out_self - out_self_ref)))

    print("KERNEL_OK")
</pallas_src>

<mosaic_0001>
module attributes {stable_mosaic.version = 11 : i64} {
  func.func @_linear_kernel_1k(%arg0: i32, %arg1: i32, %arg2: i32, %arg3: i32, %arg4: memref<1x128x256xbf16, #tpu.memory_space<vmem>>, %arg5: memref<256x256xbf16, #tpu.memory_space<vmem>>, %arg6: memref<1x256xf32, #tpu.memory_space<vmem>>, %arg7: memref<1x128x256xbf16, #tpu.memory_space<vmem>>) attributes {dimension_semantics = [#tpu.dimension_semantics<parallel>, #tpu.dimension_semantics<parallel>, #tpu.dimension_semantics<parallel>, #tpu.dimension_semantics<arbitrary>], iteration_bounds = array<i64: 2, 1, 1, 1>, scalar_prefetch = 0 : i64, scratch_operands = 0 : i64, tpu.core_type = #tpu.core_type<tc>, window_params = [{transform_indices = @transform_0, window_bounds = array<i64: 1, 128, 256>}, {transform_indices = @transform_1, window_bounds = array<i64: 256, 256>}, {transform_indices = @transform_2, window_bounds = array<i64: 1, 256>}, {transform_indices = @transform_3, window_bounds = array<i64: 1, 128, 256>}]} {
    %c0 = arith.constant 0 : index
    %c0_0 = arith.constant 0 : index
    %c0_1 = arith.constant 0 : index
    %0 = vector.load %arg4[%c0, %c0_0, %c0_1] : memref<1x128x256xbf16, #tpu.memory_space<vmem>>, vector<1x128x256xbf16>
    %1 = vector.shape_cast %0 : vector<1x128x256xbf16> to vector<128x256xbf16>
    %c0_2 = arith.constant 0 : index
    %c0_3 = arith.constant 0 : index
    %2 = vector.load %arg5[%c0_2, %c0_3] : memref<256x256xbf16, #tpu.memory_space<vmem>>, vector<256x256xbf16>
    %cst = arith.constant dense<0.000000e+00> : vector<128x256xf32>
    %3 = tpu.matmul %1, %2, %cst {dimension_numbers = #tpu.dot_dimension_numbers<[1], [0], [0], [1], [0, 0, 1, 1], [], []>} : vector<128x256xbf16>, vector<256x256xbf16>, vector<128x256xf32> -> vector<128x256xf32>
    %c0_4 = arith.constant 0 : index
    %c0_5 = arith.constant 0 : index
    %4 = vector.load %arg6[%c0_4, %c0_5] : memref<1x256xf32, #tpu.memory_space<vmem>>, vector<1x256xf32>
    %5 = vector.broadcast %4 : vector<1x256xf32> to vector<128x256xf32>
    %6 = arith.addf %3, %5 : vector<128x256xf32>
    %7 = arith.truncf %6 : vector<128x256xf32> to vector<128x256xbf16>
    %c0_6 = arith.constant 0 : index
    %c0_7 = arith.constant 0 : index
    %c0_8 = arith.constant 0 : index
    %8 = vector.load %arg7[%c0_6, %c0_7, %c0_8] : memref<1x128x256xbf16, #tpu.memory_space<vmem>>, vector<1x128x256xbf16>
    %9 = vector.shape_cast %8 : vector<1x128x256xbf16> to vector<128x256xbf16>
    %10 = vector.shape_cast %7 : vector<128x256xbf16> to vector<1x128x256xbf16>
    tpu.vector_store %arg7[%c0_6, %c0_7, %c0_8], %10 {strides = array<i32>} : memref<1x128x256xbf16, #tpu.memory_space<vmem>>, vector<1x128x256xbf16>,
    return
  }
  func.func @transform_0(%arg0: i32, %arg1: i32, %arg2: i32, %arg3: i32) -> (i32, i32, i32) {
    %c0_i32 = arith.constant 0 : i32
    return %arg0, %arg1, %arg3 : i32, i32, i32
  }
  func.func @transform_1(%arg0: i32, %arg1: i32, %arg2: i32, %arg3: i32) -> (i32, i32) {
    %c0_i32 = arith.constant 0 : i32
    return %arg3, %arg2 : i32, i32
  }
  func.func @transform_2(%arg0: i32, %arg1: i32, %arg2: i32, %arg3: i32) -> (i32, i32) {
    %c0_i32 = arith.constant 0 : i32
    %c0_i32_0 = arith.constant 0 : i32
    return %c0_i32, %arg2 : i32, i32
  }
  func.func @transform_3(%arg0: i32, %arg1: i32, %arg2: i32, %arg3: i32) -> (i32, i32, i32) {
    %c0_i32 = arith.constant 0 : i32
    return %arg0, %arg1, %arg2 : i32, i32, i32
  }
}

</mosaic_0001>

<bundles_post_ra>
// kernel: tpu_custom_call.1
= control target key start
LH: loop header
LB: loop body
LE: loop exit
PB: predicated region body
PF: predicated region fallthrough
CT: control target
= control target key end

     0   :  { %8 = vsyncpa [#allocation3], 0  ;;  %s1708_s0 = inlined_call_operand.hbm [shape: bf16[2,128,256], index: 0, kind: input, shape index: {}]   ;;  %s1709_s1 = inlined_call_operand.hbm [shape: bf16[256,256], index: 1, kind: input, shape index: {}]   ;;  %s1710_s2 = inlined_call_operand.vmem [shape: f32[1,256], index: 2, kind: input, shape index: {}]   ;;  %s1711_s3 = inlined_call_operand.hbm [shape: bf16[2,128,256], index: 3, kind: output, shape index: {}]  }
   0x1   :  { %10 = vsyncpa [#allocation3 + $0x1], 0 }
   0x2   :  { %11 = vsyncpa [#allocation6], 0 }
   0x3   :  { %12 = vsyncpa [#allocation4], 0 }
   0x4   :  { %14 = vsyncpa [#allocation4 + $0x1], 0  ;;  %s1403_s12 = smov 0   ;;  %s1405_s13 = smov 0  }
   0x5   :  { %s1407_s14 = smov 0   ;;  %s1409_s15 = smov 0  }
   0x6   :  { %s1411_s16 = smov 0   ;;  %s1413_s17 = smov 0  }
   0x7 LB: > { %s949_s18 = sadd.s32 4294967295, %s1374_s17   ;;  %s950_s19 = sadd.s32 4294967294, %s1374_s17   ;;  %s1374_s17 = sphi %s1413_s17, %s20_s17   ;;  %s1370_s16 = sphi %s1411_s16, %s1735_s16   ;;  %s1366_s15 = sphi %s1409_s15, %s1734_s15   ;;  %s1362_s14 = sphi %s1407_s14, %s1733_s14   ;;  %s1358_s13 = sphi %s1405_s13, %s1732_s13   ;;  %s1354_s12 = sphi %s1403_s12, %s1731_s12  }
   0x8   : > { %p70_p0 = scmp.ne.s32.totalorder %s1358_s13, %s1354_s12  ;;  %p1437_p1 = scmp.eq.s32.totalorder %s949_s18, 0 }
   0x9   : > { %p1441_p2 = scmp.eq.s32.totalorder %s949_s18, 1  ;;  %p158_p3 = scmp.eq.s32.totalorder %s950_s19, 1 }
   0xa   : > { %s1716_s20 = scalar_select %p1437_p1, 1, 0 }
   0xb   : > { %s1717_s21 = scalar_select %p1441_p2, 1, 0 }
   0xc   : > { %p1447_p4 = por %p1437_p1, %p70_p0  ;;  %p951_p5 = scmp.ge.s32.totalorder %s1374_s17, 1 }
   0xd   : > { %p1452_p6 = por %p158_p3, %p70_p0  ;;  %p165_p7 = scmp.lt.s32.totalorder %s1374_s17, 3 }
   0xe   : > { %s1718_s22 = scalar_select %p1447_p4, 1, 0 }
   0xf   : > { %s1719_s23 = scalar_select %p1452_p6, 1, 0 }
  0x10   : > { %p1457_p8 = pnand %p951_p5, %p165_p7  ;;  %s1376_s25 = smov [#allocation5]  }
  0x11   : > { %s183_s26 = sshll.u32 %s1376_s25, 4  ;;  %s46_s28 = sadd.s32 1, %s1370_s16  ;;  %s184_s26 = int_to_ptr.vmem [resolvable:$true] %s183_s26 }
  0x12   : > { %s1720_s24 = scalar_select %p1457_p8, 1, 0 }
  0x13   : > { %p1089_p9 = pneg %p1457_p8  ;;  %s1230_s4 = scalar_lea.hbm %s1709_s1, 4096 }
  0x14   : > { %p1231_p12 = scmp.ne.s32.totalorder %s1709_s1, %s1230_s4  ;;  %p1237_p5 = scmp.lt.u32.totalorder %s1230_s4, %s1709_s1 }
  0x15   : > { %p1466_p11 = pnand %p1089_p9, %p1437_p1 }
  0x17   : > { %p1232_p13 = pneg %p1466_p11 }
  0x19   : > { %p1233_p0 = pnand %p1232_p13, %p1231_p12 }
  0x1b   : > { %p1234_p3 = pneg %p1233_p0 }
  0x1d   : > { %p1239_p7 = pnand %p1237_p5, %p1234_p3 }
  0x1f   : > { %1242 = shalt.err (!%p1239_p7)
}
  0x20   : > { %s1243_s9 = scalar_lea.vmem %s184_s26, 4096  ;;  %p1251_p1 = scmp.lt.s32.totalorder %s184_s26, %s184_s26 }
  0x21   : > { %p1244_p9 = scmp.ne.s32.totalorder %s184_s26, %s1243_s9  ;;  %p1252_p4 = scmp.lt.s32.totalorder %s1243_s9, %s1243_s9 }
  0x23   : > { %p1246_p10 = pnand %p1244_p9, %p1232_p13  ;;  %p1253_p8 = por %p1252_p4, %p1251_p1 }
  0x25   : > { %p1247_p6 = pneg %p1246_p10 }
  0x27   : > { %p1254_p2 = pnand %p1253_p8, %p1247_p6 }
  0x29   : > { %1257 = shalt.err (!%p1254_p2)
}
  0x2a   : > { %s1377_s10 = smov 128   ;;  %s1378_s11 = smov 8  }
  0x2b   : > { %1092 = dma.hbm_to_vmem [thread:$0]  (!%p1466_p11), %s1709_s1, 4096, %s184_s26, [#allocation6], %s1377_s10, %s1377_s10, %s1378_s11  }
  0x2c   : > { %p48_p1 = scmp.ge.s32.totalorder %s46_s28, 2  ;;  %s57_s25 = sadd.s32 1, %s1362_s14 }
  0x2d   : > { %p64_p2 = scmp.ne.s32.totalorder %s1362_s14, %s1358_s13  ;;  %p65_p4 = scmp.eq.s32.totalorder %s1374_s17, 0 }
  0x2e   : > { %s1737_s28 = smov (%p48_p1, %s46_s28), 0  ;;  %p1723_p8 = scmp.ne.s32.totalorder %s1717_s21, 0 }
  0x2f   : > { %p1496_p6 = por %p65_p4, %p64_p2  ;;  %s50_s30 = ssub.s32 %s1370_s16, %s1737_s28 }
  0x30   : > { %p1502_p10 = por %p1723_p8, %p64_p2  ;;  %p1102_p12 = scmp.lt.s32.totalorder %s1374_s17, 2 }
  0x31   : > { %p55_p11 = scmp.eq.s32.totalorder %s50_s30, 0  ;;  %s205_s26 = sand.u32 1, %s1362_s14  }
  0x32   : > { %s955_s4 = sshll.u32 %s205_s26, 7  ;;  %s1031_s6 = sshll.u32 %s1370_s16, 11 }
  0x33   : > { %s1511_s5 = scalar_select %p55_p11, %s1362_s14, %s57_s25  }
  0x34   : > { %s1517_s9 = scalar_lea.hbm %s1708_s0, %s1031_s6  ;;  %s209_s21 = scalar_lea.vmem [#allocation2], %s955_s4 }
  0x35   : > { %s221_s18 = sshll.u32 %s209_s21, 4  ;;  %p1523_p13 = pnand %p1102_p12, %p1496_p6  ;;  %s1519_s18 = int_to_ptr.vmem [resolvable:$true] %s221_s18 }
  0x36   : > { %s1527_s25 = scalar_lea.sflag [#allocation3], %s205_s26  ;;  %s1258_s30 = scalar_lea.hbm %s1517_s9, 2048 }
  0x37   : > { %p1259_p0 = scmp.ne.s32.totalorder %s1517_s9, %s1258_s30  ;;  %p1260_p3 = pneg %p1523_p13 }
  0x38   : > { %s1263_s29 = scalar_lea.hbm %s1708_s0, 4096  ;;  %p1264_p9 = scmp.lt.u32.totalorder %s1517_s9, %s1708_s0 }
  0x39   : > { %p1261_p5 = pnand %p1260_p3, %p1259_p0  ;;  %p1265_p1 = scmp.lt.u32.totalorder %s1263_s29, %s1258_s30 }
  0x3a   : > { %p1267_p4 = scmp.lt.u32.totalorder %s1258_s30, %s1517_s9 }
  0x3b   : > { %p1262_p7 = pneg %p1261_p5  ;;  %p1266_p2 = por %p1265_p1, %p1264_p9 }
  0x3d   : > { %p1268_p6 = por %p1267_p4, %p1266_p2 }
  0x3f   : > { %p1269_p8 = pnand %p1268_p6, %p1262_p7 }
  0x41   : > { %1272 = shalt.err (!%p1269_p8)
}
  0x42   : > { %s1273_s26 = scalar_lea.vmem %s1519_s18, 2048  ;;  %s1379_s21 = smov [#allocation2]  }
  0x43   : > { %p1274_p12 = scmp.ne.s32.totalorder %s1519_s18, %s1273_s26  ;;  %s1278_s4 = sshll.u32 %s1379_s21, 4  ;;  %s1279_s4 = int_to_ptr.vmem [resolvable:$false] %s1278_s4 }
  0x44   : > { %s1280_s6 = scalar_lea.vmem %s1279_s4, 4096  ;;  %p1281_p5 = scmp.lt.s32.totalorder %s1519_s18, %s1279_s4 }
  0x45   : > { %p1276_p11 = pnand %p1274_p12, %p1260_p3  ;;  %p1282_p9 = scmp.lt.s32.totalorder %s1280_s6, %s1273_s26 }
  0x47   : > { %p1277_p0 = pneg %p1276_p11  ;;  %p1283_p1 = por %p1282_p9, %p1281_p5 }
  0x49   : > { %p1284_p2 = pnand %p1283_p1, %p1277_p0 }
  0x4b   : > { %1287 = shalt.err (!%p1284_p2)
}
  0x4c   : > { %1096 = dma.hbm_to_vmem [thread:$0]  (!%p1523_p13), %s1517_s9, 2048, %s1519_s18, %s1527_s25, %s1377_s10, %s1377_s10, %s1378_s11  }
  0x4d   : > { %p1726_p3 = scmp.ne.s32.totalorder %s1720_s24, 0 }
  0x4e   : > { %s1561_s30 = sand.u32 (!%p1726_p3), 1, %s1358_s13   ;;  %p1727_p7 = scmp.ne.s32.totalorder (!%p1726_p3), %s1718_s22, 0 }
  0x4f   : > { %233 = sbr.rel (%p1726_p3) target bundleno = 413 (0x19d), region = 32  ;;  %s959_s29 = sshll.u32 (!%p1726_p3), %s1561_s30, 7 }
  0x50   : > { %s236_s7 = scalar_lea.sflag (!%p1726_p3), [#allocation3], %s1561_s30  ;;  %s1567_s19 = scalar_lea.vmem (!%p1726_p3), [#allocation2], %s959_s29 }
  0x56   : > { %1341 = dma.done.wait (%p1727_p7), %s236_s7, 2048  }
  0x57   : > { %1343 = vsyncadd (%p1727_p7), %s236_s7, 4294965248  ;;  %p1728_p13 = scmp.ne.s32.totalorder %s1716_s20, 0 }
  0x59   : > { %1345 = dma.done.wait (%p1728_p13), [#allocation6], 4096  }
  0x5a   : > { %1347 = vsyncadd (%p1728_p13), [#allocation6], 4294963200  ;;  %v1158_v0 = vld [vmem:[#allocation5 + $0x4] ss:$8 sps:$4 sm:$0xff]   ;;  %v1160_v1 = vld [vmem:[#allocation5] ss:$8 sps:$4 sm:$0xff]   ;;  %v331_v48 = vlaneseq }
  0x5b   : > { %581 = vmatprep.subr.bf16.mxu0 %v1158_v0  ;;  %1049 = vmatprep.subr.bf16.mxu1 %v1158_v0  ;;  %v1161_v2 = vld [vmem:[#allocation5 + $0x14] ss:$8 sps:$4 sm:$0xff]   ;;  %v1163_v3 = vld [vmem:[#allocation5 + $0x10] ss:$8 sps:$4 sm:$0xff]   ;;  %v1164_v4 = vld [vmem:[#allocation5 + $0x24] ss:$8 sps:$4 sm:$0xff]  }
  0x5c   : > { %582 = vmatpush1.bf16.msra.mxu0 %v1160_v1  ;;  %1065 = vmatpush1.bf16.msra.mxu1 %v1160_v1  ;;  %v1166_v5 = vld [vmem:[#allocation5 + $0x20] ss:$8 sps:$4 sm:$0xff]   ;;  %v1167_v6 = vld [vmem:[#allocation5 + $0x34] ss:$8 sps:$4 sm:$0xff]   ;;  %v1169_v7 = vld [vmem:[#allocation5 + $0x30] ss:$8 sps:$4 sm:$0xff]  }
  0x5d   : > { %583 = vmatprep.subr.bf16.mxu0 %v1161_v2  ;;  %1050 = vmatprep.subr.bf16.mxu1 %v1161_v2  ;;  %v1170_v8 = vld [vmem:[#allocation5 + $0x44] ss:$8 sps:$4 sm:$0xff]   ;;  %v1172_v9 = vld [vmem:[#allocation5 + $0x40] ss:$8 sps:$4 sm:$0xff]   ;;  %v1173_v10 = vld [vmem:[#allocation5 + $0x54] ss:$8 sps:$4 sm:$0xff]  }
  0x5e   : > { %v1175_v11 = vld [vmem:[#allocation5 + $0x50] ss:$8 sps:$4 sm:$0xff]   ;;  %v1176_v12 = vld [vmem:[#allocation5 + $0x64] ss:$8 sps:$4 sm:$0xff]   ;;  %v1178_v14 = vld [vmem:[#allocation5 + $0x60] ss:$8 sps:$4 sm:$0xff]  }
  0x5f   : > { %v1208_v13 = vld [vmem:[%s1567_s19 + $0x4] ss:$8 sps:$4 sm:$0xff]   ;;  %v1179_v16 = vld [vmem:[#allocation5 + $0x74] ss:$8 sps:$4 sm:$0xff]   ;;  %v1181_v17 = vld [vmem:[#allocation5 + $0x70] ss:$8 sps:$4 sm:$0xff]  }
  0x60   : > { %584 = vmatpush1.bf16.msra.mxu0 %v1163_v3  ;;  %1066 = vmatpush1.bf16.msra.mxu1 %v1163_v3  ;;  %v1211_v15 = vld [vmem:[%s1567_s19 + $0x44] ss:$8 sps:$4 sm:$0xff]   ;;  %v1184_v19 = vld [vmem:[#allocation5 + $0x80] ss:$8 sps:$4 sm:$0xff]   ;;  %v1185_v20 = vld [vmem:[#allocation5 + $0x94] ss:$8 sps:$4 sm:$0xff]  }
  0x61   : > { %585 = vmatprep.subr.bf16.mxu0 %v1164_v4  ;;  %1051 = vmatprep.subr.bf16.mxu1 %v1164_v4  ;;  %v1182_v18 = vld [vmem:[#allocation5 + $0x84] ss:$8 sps:$4 sm:$0xff]   ;;  %v1187_v21 = vld [vmem:[#allocation5 + $0x90] ss:$8 sps:$4 sm:$0xff]   ;;  %v1190_v23 = vld [vmem:[#allocation5 + $0xa0] ss:$8 sps:$4 sm:$0xff]  }
  0x62   : > { %613 = vmatprep.mubr.bf16.mxu0 %v1208_v13  ;;  %653 = vmatprep.mubr.bf16.mxu1 %v1211_v15  ;;  %v1188_v22 = vld [vmem:[#allocation5 + $0xa4] ss:$8 sps:$4 sm:$0xff]   ;;  %v1191_v24 = vld [vmem:[#allocation5 + $0xb4] ss:$8 sps:$4 sm:$0xff]   ;;  %v1193_v25 = vld [vmem:[#allocation5 + $0xb0] ss:$8 sps:$4 sm:$0xff]  }
  0x63   : > { %v1194_v26 = vld [vmem:[#allocation5 + $0xc4] ss:$8 sps:$4 sm:$0xff]   ;;  %v1196_v27 = vld [vmem:[#allocation5 + $0xc0] ss:$8 sps:$4 sm:$0xff]   ;;  %v1197_v28 = vld [vmem:[#allocation5 + $0xd4] ss:$8 sps:$4 sm:$0xff]  }
  0x64   : > { %586 = vmatpush1.bf16.msra.mxu0 %v1166_v5  ;;  %1067 = vmatpush1.bf16.msra.mxu1 %v1166_v5  ;;  %v1199_v29 = vld [vmem:[#allocation5 + $0xd0] ss:$8 sps:$4 sm:$0xff]   ;;  %v1200_v30 = vld [vmem:[#allocation5 + $0xe4] ss:$8 sps:$4 sm:$0xff]   ;;  %v1202_v31 = vld [vmem:[#allocation5 + $0xe0] ss:$8 sps:$4 sm:$0xff]  }
  0x65   : > { %587 = vmatprep.subr.bf16.mxu0 %v1167_v6  ;;  %1052 = vmatprep.subr.bf16.mxu1 %v1167_v6  ;;  %v1203_v32 = vld [vmem:[#allocation5 + $0xf4] ss:$8 sps:$4 sm:$0xff]   ;;  %v1205_v33 = vld [vmem:[#allocation5 + $0xf0] ss:$8 sps:$4 sm:$0xff]   ;;  %v1206_v34 = vld [vmem:[%s1567_s19] ss:$8 sps:$4 sm:$0xff]  }
  0x66   : > { %v1209_v35 = vld [vmem:[%s1567_s19 + $0x40] ss:$8 sps:$4 sm:$0xff]   ;;  %v1212_v36 = vld [vmem:[%s1567_s19 + $0x14] ss:$8 sps:$4 sm:$0xff]   ;;  %v1216_v38 = vld [vmem:[%s1567_s19 + $0x10] ss:$8 sps:$4 sm:$0xff]  }
  0x67   : > { %v1214_v37 = vld [vmem:[%s1567_s19 + $0x54] ss:$8 sps:$4 sm:$0xff]   ;;  %v1217_v39 = vld [vmem:[%s1567_s19 + $0x50] ss:$8 sps:$4 sm:$0xff]   ;;  %v1218_v40 = vld [vmem:[%s1567_s19 + $0x24] ss:$8 sps:$4 sm:$0xff]  }
  0x68   : > { %588 = vmatpush1.bf16.msra.mxu0 %v1169_v7  ;;  %1068 = vmatpush1.bf16.msra.mxu1 %v1169_v7  ;;  %v1220_v41 = vld [vmem:[%s1567_s19 + $0x64] ss:$8 sps:$4 sm:$0xff]   ;;  %v1222_v42 = vld [vmem:[%s1567_s19 + $0x20] ss:$8 sps:$4 sm:$0xff]   ;;  %v1224_v44 = vld [vmem:[%s1567_s19 + $0x34] ss:$8 sps:$4 sm:$0xff]  }
  0x69   : > { %589 = vmatprep.subr.bf16.mxu0 %v1170_v8  ;;  %1053 = vmatprep.subr.bf16.mxu1 %v1170_v8  ;;  %v1223_v43 = vld [vmem:[%s1567_s19 + $0x60] ss:$8 sps:$4 sm:$0xff]   ;;  %v1226_v45 = vld [vmem:[%s1567_s19 + $0x74] ss:$8 sps:$4 sm:$0xff]   ;;  %v1228_v46 = vld [vmem:[%s1567_s19 + $0x30] ss:$8 sps:$4 sm:$0xff]  }
  0x6a   : > { %v1229_v47 = vld [vmem:[%s1567_s19 + $0x70] ss:$8 sps:$4 sm:$0xff]   ;;  %v332_v49 = vshrl.u32 %v331_v48, 7  ;;  %v329_v51 = vld [vmem:[%s1710_s2] sm:$0x3]  ;;  %s1610_s24 = scalar_lea.vmem [#allocation7], %s959_s29 }
  0x6b   : > { %s1048_s10 = sshll.u32 %s1366_s15, 11  ;;  %s825_s11 = sshll.u32 %s1610_s24, 4  ;;  %s1655_s11 = int_to_ptr.vmem [resolvable:$true] %s825_s11 }
  0x6c   : > { %590 = vmatpush1.bf16.msra.mxu0 %v1172_v9  ;;  %1069 = vmatpush1.bf16.msra.mxu1 %v1172_v9  ;;  %v333_v50 = vsub.s32 0, %v332_v49  ;;  %v337_v52 = vsub.s32 1, %v332_v49  ;;  %s1653_s15 = scalar_lea.hbm %s1711_s3, %s1048_s10  ;;  %s807_s25 = scalar_lea.sflag [#allocation4], %s1561_s30 }
  0x6d   : > { %591 = vmatprep.subr.bf16.mxu0 %v1173_v10  ;;  %1054 = vmatprep.subr.bf16.mxu1 %v1173_v10  ;;  %s1288_s8 = scalar_lea.vmem %s1655_s11, 2048  ;;  %s1380_s26 = smov [#allocation7]  }
  0x6e   : > { %v1596_v53 = vrot.slane %v329_v51, %v333_v50  ;;  %v1598_v54 = vrot.slane %v329_v51, %v337_v52  ;;  %p1289_p4 = scmp.ne.s32.totalorder %s1655_s11, %s1288_s8  ;;  %s1292_s21 = sshll.u32 %s1380_s26, 4  ;;  %s1293_s21 = int_to_ptr.vmem [resolvable:$false] %s1292_s21 }
  0x6f   : > { %s1294_s4 = scalar_lea.vmem %s1293_s21, 4096  ;;  %p1295_p12 = scmp.lt.s32.totalorder %s1655_s11, %s1293_s21 }
  0x70   : > { %592 = vmatpush1.bf16.msra.mxu0 %v1175_v11  ;;  %1070 = vmatpush1.bf16.msra.mxu1 %v1175_v11  ;;  %p1290_p6 = pnand %p1289_p4, %p1502_p10  ;;  %p1296_p11 = scmp.lt.s32.totalorder %s1294_s4, %s1288_s8 }
  0x71   : > { %593 = vmatprep.subr.bf16.mxu0 %v1176_v12  ;;  %1055 = vmatprep.subr.bf16.mxu1 %v1176_v12 }
  0x72   : > { %p1291_p8 = pneg %p1290_p6  ;;  %p1297_p0 = por %p1296_p11, %p1295_p12 }
  0x74   : > { %594 = vmatpush1.bf16.msra.mxu0 %v1178_v14  ;;  %1071 = vmatpush1.bf16.msra.mxu1 %v1178_v14  ;;  %p1298_p5 = pnand %p1297_p0, %p1291_p8 }
  0x75   : > { %595 = vmatprep.subr.bf16.mxu0 %v1179_v16  ;;  %1056 = vmatprep.subr.bf16.mxu1 %v1179_v16 }
  0x78   : > { %596 = vmatpush1.bf16.msra.mxu0 %v1181_v17  ;;  %1072 = vmatpush1.bf16.msra.mxu1 %v1181_v17 }
  0x79   : > { %597 = vmatprep.subr.bf16.mxu0 %v1182_v18  ;;  %1057 = vmatprep.subr.bf16.mxu1 %v1182_v18 }
  0x7c   : > { %598 = vmatpush1.bf16.msra.mxu0 %v1184_v19  ;;  %1073 = vmatpush1.bf16.msra.mxu1 %v1184_v19 }
  0x7d   : > { %599 = vmatprep.subr.bf16.mxu0 %v1185_v20  ;;  %1058 = vmatprep.subr.bf16.mxu1 %v1185_v20 }
  0x80   : > { %600 = vmatpush1.bf16.msra.mxu0 %v1187_v21  ;;  %1074 = vmatpush1.bf16.msra.mxu1 %v1187_v21 }
  0x81   : > { %601 = vmatprep.subr.bf16.mxu0 %v1188_v22  ;;  %1059 = vmatprep.subr.bf16.mxu1 %v1188_v22 }
  0x84   : > { %602 = vmatpush1.bf16.msra.mxu0 %v1190_v23  ;;  %1075 = vmatpush1.bf16.msra.mxu1 %v1190_v23 }
  0x85   : > { %603 = vmatprep.subr.bf16.mxu0 %v1191_v24  ;;  %1060 = vmatprep.subr.bf16.mxu1 %v1191_v24 }
  0x88   : > { %604 = vmatpush1.bf16.msra.mxu0 %v1193_v25  ;;  %1076 = vmatpush1.bf16.msra.mxu1 %v1193_v25 }
  0x89   : > { %605 = vmatprep.subr.bf16.mxu0 %v1194_v26  ;;  %1061 = vmatprep.subr.bf16.mxu1 %v1194_v26 }
  0x8c   : > { %606 = vmatpush1.bf16.msra.mxu0 %v1196_v27  ;;  %1077 = vmatpush1.bf16.msra.mxu1 %v1196_v27 }
  0x8d   : > { %607 = vmatprep.subr.bf16.mxu0 %v1197_v28  ;;  %1062 = vmatprep.subr.bf16.mxu1 %v1197_v28 }
  0x90   : > { %608 = vmatpush1.bf16.msra.mxu0 %v1199_v29  ;;  %1078 = vmatpush1.bf16.msra.mxu1 %v1199_v29 }
  0x91   : > { %609 = vmatprep.subr.bf16.mxu0 %v1200_v30  ;;  %1063 = vmatprep.subr.bf16.mxu1 %v1200_v30 }
  0x94   : > { %610 = vmatpush1.bf16.msra.mxu0 %v1202_v31  ;;  %1079 = vmatpush1.bf16.msra.mxu1 %v1202_v31 }
  0x95   : > { %611 = vmatprep.subr.bf16.mxu0 %v1203_v32  ;;  %1064 = vmatprep.subr.bf16.mxu1 %v1203_v32 }
  0x98   : > { %612 = vmatpush1.bf16.msra.mxu0 %v1205_v33  ;;  %1080 = vmatpush1.bf16.msra.mxu1 %v1205_v33 }
  0x9b   : > { %614 = vmatmul.mubr.bf16.vlgmr.msra.gmra.mrb[0].mxu0 %v1206_v34  ;;  %654 = vmatmul.mubr.bf16.vlgmr.msra.gmra.mrb[0].mxu1 %v1209_v35 }
  0x9c   : > { %623 = vmatprep.mubr.bf16.mxu0 %v1212_v36  ;;  %663 = vmatprep.mubr.bf16.mxu1 %v1214_v37 }
  0xa3   : > { %624 = vmatmul.mubr.bf16.gmra.mrb[4].mxu0 %v1216_v38  ;;  %664 = vmatmul.mubr.bf16.gmra.mrb[4].mxu1 %v1217_v39 }
  0xa4   : > { %633 = vmatprep.mubr.bf16.mxu0 %v1218_v40  ;;  %673 = vmatprep.mubr.bf16.mxu1 %v1220_v41 }
  0xab   : > { %634 = vmatmul.mubr.bf16.gmra.mrb[8].mxu0 %v1222_v42  ;;  %674 = vmatmul.mubr.bf16.gmra.mrb[8].mxu1 %v1223_v43 }
  0xac   : > { %643 = vmatprep.mubr.bf16.mxu0 %v1224_v44  ;;  %683 = vmatprep.mubr.bf16.mxu1 %v1226_v45 }
  0xb3   : > { %644 = vmatmul.mubr.bf16.gmra.mrb[12].mxu0 %v1228_v46  ;;  %684 = vmatmul.mubr.bf16.gmra.mrb[12].mxu1 %v1229_v47 }
 0x16e   : > { %v615_v55 = vpop.f32.mrb[0].mxu0  ;;  %v655_v56 = vpop.f32.mrb[0].mxu1 }
 0x16f   : > { %v616_v57 = vadd.f32 %v615_v55, %v1596_v53  ;;  %v656_v58 = vadd.f32 %v655_v56, %v1596_v53  ;;  %v617_v59 = vpop.f32.mrb[1].mxu0  ;;  %v657_v60 = vpop.f32.mrb[1].mxu1 }
 0x170   : > { %v618_v61 = vadd.f32 %v617_v59, %v1598_v54  ;;  %v658_v62 = vadd.f32 %v657_v60, %v1598_v54  ;;  %v619_v63 = vpop.f32.mrb[2].mxu0  ;;  %v659_v0 = vpop.f32.mrb[2].mxu1 }
 0x171   : > { %v620_v1 = vadd.f32 %v619_v63, %v1596_v53  ;;  %v660_v2 = vadd.f32 %v659_v0, %v1596_v53  ;;  %v621_v3 = vpop.f32.mrb[3].mxu0  ;;  %v661_v4 = vpop.f32.mrb[3].mxu1 }
 0x172   : > { %v1032_v5 = vpack.c.bf16 %v618_v61, %v616_v57  ;;  %v1040_v6 = vpack.c.bf16 %v658_v62, %v656_v58  ;;  %v622_v7 = vadd.f32 %v621_v3, %v1598_v54  ;;  %v662_v8 = vadd.f32 %v661_v4, %v1598_v54 }
 0x174   : > { %790 = vst [vmem:[%s1610_s24] sm:$0xff] %v1032_v5  ;;  %798 = vst [vmem:[%s1610_s24 + $0x40] sm:$0xff] %v1040_v6  ;;  %v1033_v9 = vpack.c.bf16 %v622_v7, %v620_v1  ;;  %v1041_v10 = vpack.c.bf16 %v662_v8, %v660_v2 }
 0x176   : > { %791 = vst [vmem:[%s1610_s24 + $0x8] sm:$0xff] %v1033_v9  ;;  %799 = vst [vmem:[%s1610_s24 + $0x48] sm:$0xff] %v1041_v10  ;;  %v625_v11 = vpop.f32.mrb[4].mxu0  ;;  %v665_v12 = vpop.f32.mrb[4].mxu1 }
 0x177   : > { %v626_v13 = vadd.f32 %v625_v11, %v1596_v53  ;;  %v666_v14 = vadd.f32 %v665_v12, %v1596_v53  ;;  %v627_v15 = vpop.f32.mrb[5].mxu0  ;;  %v667_v16 = vpop.f32.mrb[5].mxu1 }
 0x178   : > { %v628_v17 = vadd.f32 %v627_v15, %v1598_v54  ;;  %v668_v18 = vadd.f32 %v667_v16, %v1598_v54  ;;  %v629_v19 = vpop.f32.mrb[6].mxu0  ;;  %v669_v20 = vpop.f32.mrb[6].mxu1 }
 0x179   : > { %v630_v21 = vadd.f32 %v629_v19, %v1596_v53  ;;  %v670_v22 = vadd.f32 %v669_v20, %v1596_v53  ;;  %v631_v23 = vpop.f32.mrb[7].mxu0  ;;  %v671_v24 = vpop.f32.mrb[7].mxu1 }
 0x17a   : > { %v1034_v25 = vpack.c.bf16 %v628_v17, %v626_v13  ;;  %v1042_v26 = vpack.c.bf16 %v668_v18, %v666_v14  ;;  %v632_v27 = vadd.f32 %v631_v23, %v1598_v54  ;;  %v672_v28 = vadd.f32 %v671_v24, %v1598_v54 }
 0x17c   : > { %792 = vst [vmem:[%s1610_s24 + $0x10] sm:$0xff] %v1034_v25  ;;  %800 = vst [vmem:[%s1610_s24 + $0x50] sm:$0xff] %v1042_v26  ;;  %v1035_v29 = vpack.c.bf16 %v632_v27, %v630_v21  ;;  %v1043_v30 = vpack.c.bf16 %v672_v28, %v670_v22 }
 0x17e   : > { %793 = vst [vmem:[%s1610_s24 + $0x18] sm:$0xff] %v1035_v29  ;;  %801 = vst [vmem:[%s1610_s24 + $0x58] sm:$0xff] %v1043_v30  ;;  %v635_v31 = vpop.f32.mrb[8].mxu0  ;;  %v675_v32 = vpop.f32.mrb[8].mxu1 }
 0x17f   : > { %v636_v33 = vadd.f32 %v635_v31, %v1596_v53  ;;  %v676_v34 = vadd.f32 %v675_v32, %v1596_v53  ;;  %v637_v35 = vpop.f32.mrb[9].mxu0  ;;  %v677_v36 = vpop.f32.mrb[9].mxu1 }
 0x180   : > { %v638_v37 = vadd.f32 %v637_v35, %v1598_v54  ;;  %v678_v38 = vadd.f32 %v677_v36, %v1598_v54  ;;  %v639_v39 = vpop.f32.mrb[10].mxu0  ;;  %v679_v40 = vpop.f32.mrb[10].mxu1 }
 0x181   : > { %v640_v41 = vadd.f32 %v639_v39, %v1596_v53  ;;  %v680_v42 = vadd.f32 %v679_v40, %v1596_v53  ;;  %v641_v43 = vpop.f32.mrb[11].mxu0  ;;  %v681_v44 = vpop.f32.mrb[11].mxu1 }
 0x182   : > { %v1036_v45 = vpack.c.bf16 %v638_v37, %v636_v33  ;;  %v1044_v46 = vpack.c.bf16 %v678_v38, %v676_v34  ;;  %v642_v47 = vadd.f32 %v641_v43, %v1598_v54  ;;  %v682_v48 = vadd.f32 %v681_v44, %v1598_v54 }
 0x184   : > { %794 = vst [vmem:[%s1610_s24 + $0x20] sm:$0xff] %v1036_v45  ;;  %802 = vst [vmem:[%s1610_s24 + $0x60] sm:$0xff] %v1044_v46  ;;  %v1037_v49 = vpack.c.bf16 %v642_v47, %v640_v41  ;;  %v1045_v50 = vpack.c.bf16 %v682_v48, %v680_v42 }
 0x186   : > { %795 = vst [vmem:[%s1610_s24 + $0x28] sm:$0xff] %v1037_v49  ;;  %803 = vst [vmem:[%s1610_s24 + $0x68] sm:$0xff] %v1045_v50  ;;  %v645_v51 = vpop.f32.mrb[12].mxu0  ;;  %v685_v52 = vpop.f32.mrb[12].mxu1 }
 0x187   : > { %v646_v55 = vadd.f32 %v645_v51, %v1596_v53  ;;  %v686_v56 = vadd.f32 %v685_v52, %v1596_v53  ;;  %v647_v57 = vpop.f32.mrb[13].mxu0  ;;  %v687_v58 = vpop.f32.mrb[13].mxu1 }
 0x188   : > { %v648_v59 = vadd.f32 %v647_v57, %v1598_v54  ;;  %v688_v60 = vadd.f32 %v687_v58, %v1598_v54  ;;  %v649_v61 = vpop.f32.mrb[14].mxu0  ;;  %v689_v62 = vpop.f32.mrb[14].mxu1 }
 0x189   : > { %v650_v63 = vadd.f32 %v649_v61, %v1596_v53  ;;  %v690_v0 = vadd.f32 %v689_v62, %v1596_v53  ;;  %v651_v1 = vpop.f32.mrb[15].mxu0  ;;  %v691_v2 = vpop.f32.mrb[15].mxu1 }
 0x18a   : > { %v1038_v3 = vpack.c.bf16 %v648_v59, %v646_v55  ;;  %v1046_v4 = vpack.c.bf16 %v688_v60, %v686_v56  ;;  %v652_v5 = vadd.f32 %v651_v1, %v1598_v54  ;;  %v692_v6 = vadd.f32 %v691_v2, %v1598_v54 }
 0x18c   : > { %796 = vst [vmem:[%s1610_s24 + $0x30] sm:$0xff] %v1038_v3  ;;  %804 = vst [vmem:[%s1610_s24 + $0x70] sm:$0xff] %v1046_v4  ;;  %v1039_v53 = vpack.c.bf16 %v652_v5, %v650_v63  ;;  %v1047_v7 = vpack.c.bf16 %v692_v6, %v690_v0 }
 0x18e   : > { %797 = vst [vmem:[%s1610_s24 + $0x38] sm:$0xff] %v1039_v53  ;;  %805 = vst [vmem:[%s1610_s24 + $0x78] sm:$0xff] %v1047_v7 }
 0x18f   : > { %1301 = shalt.err (!%p1298_p5)
}
 0x190   : > { %s1302_s6 = scalar_lea.hbm %s1653_s15, 2048  ;;  %s1306_s19 = scalar_lea.hbm %s1711_s3, 4096 }
 0x191   : > { %p1303_p9 = scmp.ne.s32.totalorder %s1653_s15, %s1302_s6  ;;  %p1307_p3 = scmp.lt.u32.totalorder %s1653_s15, %s1711_s3 }
 0x192   : > { %p1308_p7 = scmp.lt.u32.totalorder %s1306_s19, %s1302_s6  ;;  %p1310_p4 = scmp.lt.u32.totalorder %s1302_s6, %s1653_s15 }
 0x193   : > { %p1304_p1 = pnand %p1303_p9, %p1502_p10 }
 0x194   : > { %p1309_p13 = por %p1308_p7, %p1307_p3 }
 0x195   : > { %p1305_p2 = pneg %p1304_p1 }
 0x196   : > { %p1311_p6 = por %p1310_p4, %p1309_p13 }
 0x198   : > { %p1312_p8 = pnand %p1311_p6, %p1305_p2 }
 0x19a   : > { %1315 = shalt.err (!%p1312_p8)
}
 0x19b   : > { %s1381_s24 = smov 128   ;;  %s1382_s10 = smov 8  }
 0x19c   : > { %1087 = dma.vmem_to_hbm [thread:$0]  (%p1502_p10), %s1655_s11, 2048, %s1653_s15, %s807_s25, %s1381_s24, %s1381_s24, %s1382_s10  }
 0x19d PF: > { %s840_s9 = sand.u32 1, %s1354_s12   ;;  %p1729_p12 = scmp.ne.s32.totalorder %s1719_s23, 0 }
 0x19e   : > { %p1730_p11 = scmp.ge.s32.totalorder %s1374_s17, 2  ;;  %s841_s18 = scalar_lea.sflag [#allocation4], %s840_s9 }
 0x1a0   : > { %p1098_p0 = pnand %p1730_p11, %p1729_p12 }
 0x1a2   : > { %1349 = dma.done.wait (!%p1098_p0), %s841_s18, 2048  }
 0x1a3   : > { %1351 = vsyncadd (!%p1098_p0), %s841_s18, 4294965248  ;;  %s20_s17 = sadd.s32 1, %s1374_s17   ;;  %s1731_s12 = smov %s1358_s13 }
 0x1a4   : > { %p17_p5 = scmp.ge.s32.totalorder %s20_s17, 4   ;;  %s1732_s13 = smov %s1362_s14 }
 0x1a5   : > { %s1733_s14 = smov %s1511_s5  ;;  %s1734_s15 = smov %s1370_s16 }
 0x1a6   : > { %s1735_s16 = smov %s1737_s28  ;;  %19 = sbr.rel (!%p17_p5) target bundleno = 7 (0x7), region = 85 }
 0x1ad   :  { %846 = vsyncpa [#allocation3], 1 }
 0x1ae   :  { %848 = vsyncpa [#allocation3 + $0x1], 1 }
 0x1af   :  { %849 = vsyncpa [#allocation6], 1 }
 0x1b0   :  { %850 = vsyncpa [#allocation4], 1 }
 0x1b1   :  { %852 = vsyncpa [#allocation4 + $0x1], 1 }

</bundles_post_ra>
